<compile_context>
chip_gen: v5e
topology: v5e:2x2
jax: 0.10.0
libtpu: 0.0.40
codegen_flags: <defaults>
</compile_context>

<pallas_src>
import functools

import jax
import jax.numpy as jnp
from jax.experimental import pallas as pl
from jax.experimental.pallas import tpu as pltpu

LANE = 128
SUBLANE = 8


def _round_up(n, m):
    return ((n + m - 1) // m) * m


def _ecr_mlp_kernel(x_ref, p_ref, w1x_ref, wpe_ref, b1_ref, w2_ref, b2_ref,
                    o_ref):
    """One batch tile: out = x + (relu(x@W1x + p@Wpe + b1_eff) @ W2 + b2)."""
    xb = x_ref[...].astype(jnp.bfloat16)          # bf16 operands for the MXU
    pb = p_ref[...].astype(jnp.bfloat16)

    h = (jnp.dot(xb, w1x_ref[...], preferred_element_type=jnp.float32)
         + jnp.dot(pb, wpe_ref[...], preferred_element_type=jnp.float32)
         + b1_ref[...])
    h = jnp.maximum(h, 0.0).astype(jnp.bfloat16)  # ReLU, bf16 back onto the MXU

    res = jnp.dot(h, w2_ref[...], preferred_element_type=jnp.float32) + b2_ref[...]
    # Re-read x from VMEM for the residual add instead of keeping a f32 tile
    # live across both matmuls (a VMEM reload is ~free; the live tile is not).
    o_ref[...] = (x_ref[...] + res).astype(o_ref.dtype)


def prepare_params(params):
    """One-time preprocessing: fold the embedding Linear into layer 1 and pad
    every weight to lane multiples.  Cache the result per parameter set."""
    we, be, w1, b1, w2, b2 = (params["we"], params["be"], params["w1"],
                              params["b1"], params["w2"], params["b2"])
    parameter_dim, embed_dim = we.shape
    input_dim = w1.shape[0] - embed_dim
    hidden_dim, output_dim = w2.shape
    assert output_dim == input_dim, "residual add requires output_dim == input_dim"

    w1x = w1[:input_dim]                 # [in,    hid]
    w1e = w1[input_dim:]                 # [embed, hid]
    wpe = we @ w1e                       # [pdim,  hid]   (f32 fold)
    b1_eff = be @ w1e + b1               # [hid]

    din_p = _round_up(input_dim, LANE)
    dpar_p = _round_up(parameter_dim, LANE)
    dhid_p = _round_up(hidden_dim, LANE)

    def pad2(a, rows, cols, dtype):
        buf = jnp.zeros((rows, cols), dtype)
        return buf.at[: a.shape[0], : a.shape[1]].set(a.astype(dtype))

    return {
        "w1x": pad2(w1x, din_p, dhid_p, jnp.bfloat16),
        "wpe": pad2(wpe, dpar_p, dhid_p, jnp.bfloat16),
        "b1": pad2(b1_eff.reshape(1, -1), 1, dhid_p, jnp.float32),
        "w2": pad2(w2, dhid_p, din_p, jnp.bfloat16),
        "b2": pad2(b2.reshape(1, -1), 1, din_p, jnp.float32),
    }


@functools.partial(jax.jit, static_argnames=("block_b",))
def ecr_mlp_forward(x, parameters, prep, *, block_b=256):
    """x: [B, input_dim], parameters: [B, parameter_dim] -> [B, input_dim]."""
    B, input_dim = x.shape
    parameter_dim = parameters.shape[-1]
    dhid_p, din_p = prep["w2"].shape
    dpar_p = prep["wpe"].shape[0]

    # Pad streamed feature axes only when not already lane-aligned; the batch
    # axis is never padded (cdiv grid + masked partial last block).
    if input_dim != din_p:
        x_in = jnp.zeros((B, din_p), jnp.float32).at[:, :input_dim].set(
            x.astype(jnp.float32))
    else:
        x_in = x.astype(jnp.float32)
    if parameter_dim != dpar_p:
        p_in = jnp.zeros((B, dpar_p), jnp.float32).at[:, :parameter_dim].set(
            parameters.astype(jnp.float32))
    else:
        p_in = parameters.astype(jnp.float32)

    # Batch tile: modest (avoid vreg spills / huge double buffers) and split so
    # the grid has >=2 steps whenever B allows (pipelining + v7x megacore).
    tb = min(block_b, _round_up(B, SUBLANE))
    if B <= tb and B > 2 * SUBLANE:
        tb = _round_up(pl.cdiv(B, 2), SUBLANE)
    grid = (pl.cdiv(B, tb),)

    def stream_spec(cols):
        return pl.BlockSpec((tb, cols), lambda i: (i, 0))

    def const_spec(shape):
        # Constant across the grid (index_map always (0,0)) -> single buffer.
        return pl.BlockSpec(shape, lambda i: (0, 0),
                            pipeline_mode=pl.Buffered(1))

    # VMEM budget from the actual footprint; clamp so it is safe on v7x's
    # 64 MiB physical VMEM while still generous on v5e/v6e.
    streamed = 2 * (tb * din_p * 4 + tb * dpar_p * 4 + tb * din_p * 4)
    weights = (din_p * dhid_p + dpar_p * dhid_p + dhid_p * din_p) * 2 \
        + (dhid_p + din_p) * 4
    interm = tb * dhid_p * 6 + tb * din_p * 4 + tb * (din_p + dpar_p) * 2
    vmem_limit = int(min(max(int(1.5 * (streamed + 2 * weights + interm)),
                             16 * 1024 * 1024), 56 * 1024 * 1024))

    flops = 2 * B * (din_p * dhid_p + dpar_p * dhid_p + dhid_p * din_p)
    bytes_accessed = (int(x_in.size) * 4 + int(p_in.size) * 4 + B * din_p * 4
                      + sum(int(prep[k].size) * prep[k].dtype.itemsize
                            for k in ("w1x", "wpe", "b1", "w2", "b2")))

    out = pl.pallas_call(
        _ecr_mlp_kernel,
        out_shape=jax.ShapeDtypeStruct((B, din_p), jnp.float32),
        grid=grid,
        in_specs=[
            stream_spec(din_p),            # x            (batch streamed)
            stream_spec(dpar_p),           # parameters   (batch streamed)
            const_spec((din_p, dhid_p)),   # W1x          (VMEM resident)
            const_spec((dpar_p, dhid_p)),  # Wpe = We@W1e (VMEM resident)
            const_spec((1, dhid_p)),       # b1_eff       (VMEM resident)
            const_spec((dhid_p, din_p)),   # W2           (VMEM resident)
            const_spec((1, din_p)),        # b2           (VMEM resident)
        ],
        out_specs=pl.BlockSpec((tb, din_p), lambda i: (i, 0)),
        compiler_params=pltpu.CompilerParams(
            dimension_semantics=("parallel",),
            vmem_limit_bytes=vmem_limit,
        ),
        cost_estimate=pl.CostEstimate(flops=flops, transcendentals=0,
                                      bytes_accessed=bytes_accessed),
    )(x_in, p_in, prep["w1x"], prep["wpe"], prep["b1"], prep["w2"], prep["b2"])

    if din_p != input_dim:
        out = out[:, :input_dim]
    return out


def init_params(key, input_dim, parameter_dim, output_dim, hidden_dim, embed_dim):
    """Deterministic synthetic parameter init (stored as [in, out] matrices)."""
    ks = jax.random.split(key, 6)
    scale = 0.1
    we = scale * jax.random.normal(ks[0], (parameter_dim, embed_dim), jnp.float32)
    be = scale * jax.random.normal(ks[1], (embed_dim,), jnp.float32)
    w1 = scale * jax.random.normal(ks[2], (input_dim + embed_dim, hidden_dim), jnp.float32)
    b1 = scale * jax.random.normal(ks[3], (hidden_dim,), jnp.float32)
    w2 = scale * jax.random.normal(ks[4], (hidden_dim, output_dim), jnp.float32)
    b2 = scale * jax.random.normal(ks[5], (output_dim,), jnp.float32)
    return {"we": we, "be": be, "w1": w1, "b1": b1, "w2": w2, "b2": b2}


def reference_forward(x, parameters, params):
    emb = parameters @ params["we"] + params["be"]
    comb = jnp.concatenate([x, emb], axis=-1)
    h = jax.nn.relu(comb @ params["w1"] + params["b1"])
    res = h @ params["w2"] + params["b2"]
    return x + res


if __name__ == "__main__":
    # Small shapes consistent with the module (output_dim == input_dim for residual).
    B = 64
    input_dim = 16
    parameter_dim = 8
    output_dim = 16
    hidden_dim = 32
    embed_dim = 16

    key = jax.random.PRNGKey(0)
    kx, kp, kw = jax.random.split(key, 3)
    x = jax.random.normal(kx, (B, input_dim), jnp.float32)
    parameters = jax.random.normal(kp, (B, parameter_dim), jnp.float32)
    params = init_params(kw, input_dim, parameter_dim, output_dim, hidden_dim, embed_dim)

    prep = prepare_params(params)          # one-time fold + pad (cache per param set)

    out = ecr_mlp_forward(x, parameters, prep)
    out = jax.block_until_ready(out)

    ref = reference_forward(x, parameters, params)
    assert out.shape == (B, input_dim)
    # bf16 MXU operands (f32 accumulate) -> loosened tolerance vs f32 reference.
    assert jnp.allclose(out, ref, atol=2e-2, rtol=2e-2), "mismatch vs reference"

    print("KERNEL_OK")
</pallas_src>

<mosaic_0001>
module attributes {stable_mosaic.version = 11 : i64} {
  func.func @_ecr_mlp_kernel(%arg0: i32, %arg1: memref<32x128xf32, #tpu.memory_space<vmem>>, %arg2: memref<32x128xf32, #tpu.memory_space<vmem>>, %arg3: memref<128x128xbf16, #tpu.memory_space<vmem>>, %arg4: memref<128x128xbf16, #tpu.memory_space<vmem>>, %arg5: memref<1x128xf32, #tpu.memory_space<vmem>>, %arg6: memref<128x128xbf16, #tpu.memory_space<vmem>>, %arg7: memref<1x128xf32, #tpu.memory_space<vmem>>, %arg8: memref<32x128xf32, #tpu.memory_space<vmem>>) attributes {dimension_semantics = [#tpu.dimension_semantics<parallel>], iteration_bounds = array<i64: 2>, scalar_prefetch = 0 : i64, scratch_operands = 0 : i64, tpu.core_type = #tpu.core_type<tc>, window_params = [{transform_indices = @transform_0, window_bounds = array<i64: 32, 128>}, {transform_indices = @transform_1, window_bounds = array<i64: 32, 128>}, {pipeline_mode = #tpu.pipeline_mode<synchronous>, transform_indices = @transform_2, window_bounds = array<i64: 128, 128>}, {pipeline_mode = #tpu.pipeline_mode<synchronous>, transform_indices = @transform_3, window_bounds = array<i64: 128, 128>}, {pipeline_mode = #tpu.pipeline_mode<synchronous>, transform_indices = @transform_4, window_bounds = array<i64: 1, 128>}, {pipeline_mode = #tpu.pipeline_mode<synchronous>, transform_indices = @transform_5, window_bounds = array<i64: 128, 128>}, {pipeline_mode = #tpu.pipeline_mode<synchronous>, transform_indices = @transform_6, window_bounds = array<i64: 1, 128>}, {transform_indices = @transform_7, window_bounds = array<i64: 32, 128>}]} {
    %c0 = arith.constant 0 : index
    %c0_0 = arith.constant 0 : index
    %0 = vector.load %arg1[%c0, %c0_0] : memref<32x128xf32, #tpu.memory_space<vmem>>, vector<32x128xf32>
    %1 = arith.truncf %0 : vector<32x128xf32> to vector<32x128xbf16>
    %c0_1 = arith.constant 0 : index
    %c0_2 = arith.constant 0 : index
    %2 = vector.load %arg2[%c0_1, %c0_2] : memref<32x128xf32, #tpu.memory_space<vmem>>, vector<32x128xf32>
    %3 = arith.truncf %2 : vector<32x128xf32> to vector<32x128xbf16>
    %c0_3 = arith.constant 0 : index
    %c0_4 = arith.constant 0 : index
    %4 = vector.load %arg3[%c0_3, %c0_4] : memref<128x128xbf16, #tpu.memory_space<vmem>>, vector<128x128xbf16>
    %cst = arith.constant dense<0.000000e+00> : vector<32x128xf32>
    %5 = tpu.matmul %1, %4, %cst {dimension_numbers = #tpu.dot_dimension_numbers<[1], [0], [0], [1], [0, 0, 1, 1], [], []>} : vector<32x128xbf16>, vector<128x128xbf16>, vector<32x128xf32> -> vector<32x128xf32>
    %c0_5 = arith.constant 0 : index
    %c0_6 = arith.constant 0 : index
    %6 = vector.load %arg4[%c0_5, %c0_6] : memref<128x128xbf16, #tpu.memory_space<vmem>>, vector<128x128xbf16>
    %cst_7 = arith.constant dense<0.000000e+00> : vector<32x128xf32>
    %7 = tpu.matmul %3, %6, %cst_7 {dimension_numbers = #tpu.dot_dimension_numbers<[1], [0], [0], [1], [0, 0, 1, 1], [], []>} : vector<32x128xbf16>, vector<128x128xbf16>, vector<32x128xf32> -> vector<32x128xf32>
    %8 = arith.addf %5, %7 : vector<32x128xf32>
    %c0_8 = arith.constant 0 : index
    %c0_9 = arith.constant 0 : index
    %9 = vector.load %arg5[%c0_8, %c0_9] : memref<1x128xf32, #tpu.memory_space<vmem>>, vector<1x128xf32>
    %10 = vector.broadcast %9 : vector<1x128xf32> to vector<32x128xf32>
    %11 = arith.addf %8, %10 : vector<32x128xf32>
    %cst_10 = arith.constant 0.000000e+00 : f32
    %12 = vector.broadcast %cst_10 : f32 to vector<32x128xf32>
    %13 = arith.maximumf %11, %12 : vector<32x128xf32>
    %14 = arith.truncf %13 : vector<32x128xf32> to vector<32x128xbf16>
    %c0_11 = arith.constant 0 : index
    %c0_12 = arith.constant 0 : index
    %15 = vector.load %arg6[%c0_11, %c0_12] : memref<128x128xbf16, #tpu.memory_space<vmem>>, vector<128x128xbf16>
    %cst_13 = arith.constant dense<0.000000e+00> : vector<32x128xf32>
    %16 = tpu.matmul %14, %15, %cst_13 {dimension_numbers = #tpu.dot_dimension_numbers<[1], [0], [0], [1], [0, 0, 1, 1], [], []>} : vector<32x128xbf16>, vector<128x128xbf16>, vector<32x128xf32> -> vector<32x128xf32>
    %c0_14 = arith.constant 0 : index
    %c0_15 = arith.constant 0 : index
    %17 = vector.load %arg7[%c0_14, %c0_15] : memref<1x128xf32, #tpu.memory_space<vmem>>, vector<1x128xf32>
    %18 = vector.broadcast %17 : vector<1x128xf32> to vector<32x128xf32>
    %19 = arith.addf %16, %18 : vector<32x128xf32>
    %c0_16 = arith.constant 0 : index
    %c0_17 = arith.constant 0 : index
    %20 = vector.load %arg1[%c0_16, %c0_17] : memref<32x128xf32, #tpu.memory_space<vmem>>, vector<32x128xf32>
    %21 = arith.addf %20, %19 : vector<32x128xf32>
    %c0_18 = arith.constant 0 : index
    %c0_19 = arith.constant 0 : index
    %22 = vector.load %arg8[%c0_18, %c0_19] : memref<32x128xf32, #tpu.memory_space<vmem>>, vector<32x128xf32>
    tpu.vector_store %arg8[%c0_18, %c0_19], %21 {strides = array<i32>} : memref<32x128xf32, #tpu.memory_space<vmem>>, vector<32x128xf32>,
    return
  }
  func.func @transform_0(%arg0: i32) -> (i32, i32) {
    %c0_i32 = arith.constant 0 : i32
    %c0_i32_0 = arith.constant 0 : i32
    return %arg0, %c0_i32 : i32, i32
  }
  func.func @transform_1(%arg0: i32) -> (i32, i32) {
    %c0_i32 = arith.constant 0 : i32
    %c0_i32_0 = arith.constant 0 : i32
    return %arg0, %c0_i32 : i32, i32
  }
  func.func @transform_2(%arg0: i32) -> (i32, i32) {
    %c0_i32 = arith.constant 0 : i32
    %c0_i32_0 = arith.constant 0 : i32
    %c0_i32_1 = arith.constant 0 : i32
    return %c0_i32, %c0_i32_0 : i32, i32
  }
  func.func @transform_3(%arg0: i32) -> (i32, i32) {
    %c0_i32 = arith.constant 0 : i32
    %c0_i32_0 = arith.constant 0 : i32
    %c0_i32_1 = arith.constant 0 : i32
    return %c0_i32, %c0_i32_0 : i32, i32
  }
  func.func @transform_4(%arg0: i32) -> (i32, i32) {
    %c0_i32 = arith.constant 0 : i32
    %c0_i32_0 = arith.constant 0 : i32
    %c0_i32_1 = arith.constant 0 : i32
    return %c0_i32, %c0_i32_0 : i32, i32
  }
  func.func @transform_5(%arg0: i32) -> (i32, i32) {
    %c0_i32 = arith.constant 0 : i32
    %c0_i32_0 = arith.constant 0 : i32
    %c0_i32_1 = arith.constant 0 : i32
    return %c0_i32, %c0_i32_0 : i32, i32
  }
  func.func @transform_6(%arg0: i32) -> (i32, i32) {
    %c0_i32 = arith.constant 0 : i32
    %c0_i32_0 = arith.constant 0 : i32
    %c0_i32_1 = arith.constant 0 : i32
    return %c0_i32, %c0_i32_0 : i32, i32
  }
  func.func @transform_7(%arg0: i32) -> (i32, i32) {
    %c0_i32 = arith.constant 0 : i32
    %c0_i32_0 = arith.constant 0 : i32
    return %arg0, %c0_i32 : i32, i32
  }
}

</mosaic_0001>

<bundles_post_ra>
// kernel: ecr_mlp_forward.1
= control target key start
LH: loop header
LB: loop body
LE: loop exit
PB: predicated region body
PF: predicated region fallthrough
CT: control target
= control target key end

     0   :  { %s858_s24 = smov 0   ;;  %s961_s0 = inlined_call_operand.vmem [shape: f32[64,128], index: 0, kind: input, shape index: {}]   ;;  %s962_s1 = inlined_call_operand.vmem [shape: f32[64,128], index: 1, kind: input, shape index: {}]   ;;  %s963_s2 = inlined_call_operand.vmem [shape: bf16[128,128], index: 2, kind: input, shape index: {}]   ;;  %s964_s3 = inlined_call_operand.vmem [shape: bf16[128,128], index: 3, kind: input, shape index: {}]   ;;  %s965_s4 = inlined_call_operand.vmem [shape: f32[1,128], index: 4, kind: input, shape index: {}]   ;;  %s966_s5 = inlined_call_operand.vmem [shape: bf16[128,128], index: 5, kind: input, shape index: {}]   ;;  %s967_s6 = inlined_call_operand.vmem [shape: f32[1,128], index: 6, kind: input, shape index: {}]   ;;  %s968_s7 = inlined_call_operand.vmem [shape: f32[64,128], index: 7, kind: output, shape index: {}]  }
   0x1 LB: > { %s659_s25 = sadd.s32 4294967295, %s816_s24   ;;  %p663_p0 = scmp.ge.s32.totalorder %s816_s24, 1  ;;  %s816_s24 = sphi %s858_s24, %s17_s24  }
   0x2   : > { %p249_p1 = scmp.lt.s32.totalorder %s816_s24, 3 }
   0x4   : > { %p250_p2 = pnand %p663_p0, %p249_p1 }
   0x5   : > { %s664_s15 = sshll.u32 (!%p250_p2), %s659_s25, 2 }
   0x6   : > { %253 = sbr.rel (%p250_p2) target bundleno = 347 (0x15b), region = 48  ;;  %p287_p3 = scmp.lt.s32.totalorder (!%p250_p2), %s664_s15, 7 }
   0xb   : > { %v783_v0 = vld [vmem:[%s964_s3 + $0x38] sm:$0xff]  ;;  %v782_v2 = vld [vmem:[%s964_s3 + $0x30] sm:$0xff]  ;;  %v781_v4 = vld [vmem:[%s964_s3 + $0x28] sm:$0xff]  ;;  %s970_s15 = smov (!%p287_p3, %s664_s15), 7 }
   0xc   : > { %v775_v1 = vld [vmem:[%s963_s2 + $0x38] sm:$0xff]  ;;  %396 = vmatpush.bf16.msra.mxu0 %v783_v0  ;;  %v774_v3 = vld [vmem:[%s963_s2 + $0x30] sm:$0xff]  ;;  %792 = vmatpush.bf16.msra.mxu3 %v783_v0  ;;  %v773_v5 = vld [vmem:[%s963_s2 + $0x28] sm:$0xff]  ;;  %s905_s8 = sshll.u32 %s970_s15, 3 }
   0xd   : > { %463 = vmatpush.bf16.msra.mxu1 %v775_v1  ;;  %v780_v6 = vld [vmem:[%s964_s3 + $0x20] sm:$0xff]  ;;  %v779_v8 = vld [vmem:[%s964_s3 + $0x18] sm:$0xff]  ;;  %v778_v11 = vld [vmem:[%s964_s3 + $0x10] sm:$0xff]  ;;  %s296_s17 = scalar_lea.vmem %s962_s1, %s905_s8  ;;  %s290_s20 = scalar_lea.vmem %s961_s0, %s905_s8 }
   0xe   : > { %v772_v7 = vld [vmem:[%s963_s2 + $0x20] sm:$0xff]  ;;  %v771_v9 = vld [vmem:[%s963_s2 + $0x18] sm:$0xff]  ;;  %v770_v12 = vld [vmem:[%s963_s2 + $0x10] sm:$0xff]  ;;  %s302_s22 = scalar_lea.vmem %s968_s7, %s905_s8 }
   0xf   : > { %v791_v10 = vld [vmem:[%s966_s5 + $0x38] sm:$0xff]  ;;  %v790_v13 = vld [vmem:[%s966_s5 + $0x30] sm:$0xff]  ;;  %v777_v14 = vld [vmem:[%s964_s3 + $0x8] sm:$0xff] }
  0x10   : > { %397 = vmatpush.bf16.msra.mxu0 %v782_v2  ;;  %793 = vmatpush.bf16.msra.mxu3 %v782_v2  ;;  %v769_v15 = vld [vmem:[%s963_s2 + $0x8] sm:$0xff]  ;;  %v776_v17 = vld [vmem:[%s964_s3] sm:$0xff]  ;;  %v312_v23 = vld [vmem:[%s296_s17 + $0x10] sm:$0xff] }
  0x11   : > { %464 = vmatpush.bf16.msra.mxu1 %v774_v3  ;;  %564 = vmatpush.bf16.msra.mxu2 %v791_v10  ;;  %v789_v16 = vld [vmem:[%s966_s5 + $0x28] sm:$0xff]  ;;  %v768_v18 = vld [vmem:[%s963_s2] sm:$0xff]  ;;  %v313_v24 = vld [vmem:[%s296_s17 + $0x18] sm:$0xff] }
  0x12   : > { %v310_v19 = vld [vmem:[%s296_s17] sm:$0xff]  ;;  %v311_v20 = vld [vmem:[%s296_s17 + $0x8] sm:$0xff]  ;;  %v315_v28 = vpack.c.bf16 %v313_v24, %v312_v23  ;;  %v306_v29 = vld [vmem:[%s290_s20 + $0x10] sm:$0xff] }
  0x13   : > { %v304_v21 = vld [vmem:[%s290_s20] sm:$0xff]  ;;  %v305_v22 = vld [vmem:[%s290_s20 + $0x8] sm:$0xff]  ;;  %v314_v26 = vpack.c.bf16 %v311_v20, %v310_v19  ;;  %v307_v30 = vld [vmem:[%s290_s20 + $0x18] sm:$0xff] }
  0x14   : > { %398 = vmatpush.bf16.msra.mxu0 %v781_v4  ;;  %794 = vmatpush.bf16.msra.mxu3 %v781_v4  ;;  %v788_v25 = vld [vmem:[%s966_s5 + $0x20] sm:$0xff]  ;;  %v308_v27 = vpack.c.bf16 %v305_v22, %v304_v21  ;;  %v309_v31 = vpack.c.bf16 %v307_v30, %v306_v29  ;;  %v787_v32 = vld [vmem:[%s966_s5 + $0x18] sm:$0xff]  ;;  %v786_v33 = vld [vmem:[%s966_s5 + $0x10] sm:$0xff] }
  0x15   : > { %465 = vmatpush.bf16.msra.mxu1 %v773_v5  ;;  %565 = vmatpush.bf16.msra.mxu2 %v790_v13  ;;  %v785_v34 = vld [vmem:[%s966_s5 + $0x8] sm:$0xff]  ;;  %v784_v35 = vld [vmem:[%s966_s5] sm:$0xff] }
  0x16   : > { %v808_v39 = vld [vmem:[%s965_s4] ss:$0 sm:$0xff] }
  0x17   : > { %v809_v59 = vld [vmem:[%s967_s6] ss:$0 sm:$0xff] }
  0x18   : > { %399 = vmatpush.bf16.msra.mxu0 %v780_v6  ;;  %795 = vmatpush.bf16.msra.mxu3 %v780_v6 }
  0x19   : > { %466 = vmatpush.bf16.msra.mxu1 %v772_v7  ;;  %566 = vmatpush.bf16.msra.mxu2 %v789_v16 }
  0x1c   : > { %400 = vmatpush.bf16.msra.mxu0 %v779_v8  ;;  %796 = vmatpush.bf16.msra.mxu3 %v779_v8 }
  0x1d   : > { %467 = vmatpush.bf16.msra.mxu1 %v771_v9  ;;  %567 = vmatpush.bf16.msra.mxu2 %v788_v25 }
  0x20   : > { %401 = vmatpush.bf16.msra.mxu0 %v778_v11  ;;  %797 = vmatpush.bf16.msra.mxu3 %v778_v11 }
  0x21   : > { %468 = vmatpush.bf16.msra.mxu1 %v770_v12  ;;  %568 = vmatpush.bf16.msra.mxu2 %v787_v32 }
  0x24   : > { %402 = vmatpush.bf16.msra.mxu0 %v777_v14  ;;  %798 = vmatpush.bf16.msra.mxu3 %v777_v14 }
  0x25   : > { %469 = vmatpush.bf16.msra.mxu1 %v769_v15  ;;  %569 = vmatpush.bf16.msra.mxu2 %v786_v33 }
  0x28   : > { %403 = vmatpush.bf16.msra.mxu0 %v776_v17  ;;  %799 = vmatpush.bf16.msra.mxu3 %v776_v17 }
  0x29   : > { %470 = vmatpush.bf16.msra.mxu1 %v768_v18  ;;  %570 = vmatpush.bf16.msra.mxu2 %v785_v34 }
  0x2b   : > { %404 = vmatmul.bf16.vlgmr.msra.gmra.mxu0 %v314_v26  ;;  %409 = vmatmul.bf16.vlgmr.msra.gmra.mxu3 %v315_v28 }
  0x2c   : > { %471 = vmatmul.bf16.vlgmr.msra.gmra.mxu1 %v308_v27 }
  0x2d   : > { %571 = vmatpush.bf16.msra.mxu2 %v784_v35 }
  0x3c   : > { %476 = vmatmul.bf16.gmra.mxu1 %v309_v31 }
  0xa8   : > { %v405_v36 = vpop.f32.mrf.mxu0 }
  0xa9   : > { %v472_v37 = vpop.f32.mrf.mxu1 }
  0xaa   : > { %v473_v38 = vadd.f32 %v472_v37, %v405_v36 }
  0xac   : > { %v486_v42 = vadd.f32 %v808_v39, %v473_v38 }
  0xae   : > { %v490_v45 = vmax.f32 %v486_v42, 0.0  ;;  %v410_v47 = vpop.f32.mrf.mxu3 }
  0xb0   : > { %v407_v40 = vpop.f32.mrf.mxu0 }
  0xb1   : > { %v474_v41 = vpop.f32.mrf.mxu1 }
  0xb2   : > { %v475_v43 = vadd.f32 %v474_v41, %v407_v40 }
  0xb4   : > { %v487_v44 = vadd.f32 %v808_v39, %v475_v43 }
  0xb6   : > { %v491_v46 = vmax.f32 %v487_v44, 0.0  ;;  %v412_v51 = vpop.f32.mrf.mxu3 }
  0xb8   : > { %v494_v48 = vpack.c.bf16 %v491_v46, %v490_v45 }
  0xb9   : > { %v477_v49 = vpop.f32.mrf.mxu1 }
  0xba   : > { %572 = vmatmul.bf16.vlgmr.msra.gmra.mxu2 %v494_v48  ;;  %v478_v50 = vadd.f32 %v477_v49, %v410_v47 }
  0xbc   : > { %v488_v53 = vadd.f32 %v808_v39, %v478_v50 }
  0xbe   : > { %v492_v56 = vmax.f32 %v488_v53, 0.0 }
  0xc1   : > { %v479_v52 = vpop.f32.mrf.mxu1 }
  0xc2   : > { %v480_v54 = vadd.f32 %v479_v52, %v412_v51 }
  0xc4   : > { %v489_v55 = vadd.f32 %v808_v39, %v480_v54 }
  0xc6   : > { %v493_v57 = vmax.f32 %v489_v55, 0.0 }
  0xc8   : > { %v495_v58 = vpack.c.bf16 %v493_v57, %v492_v56 }
  0xca   : > { %577 = vmatmul.bf16.gmra.mxu2 %v495_v58 }
 0x13d   : > { %v573_v60 = vpop.f32.mrf.mxu2 }
 0x13e   : > { %v574_v61 = vadd.f32 %v809_v59, %v573_v60 }
 0x140   : > { %v583_v62 = vadd.f32 %v574_v61, %v304_v21 }
 0x142   : > { %587 = vst [vmem:[%s302_s22] sm:$0xff] %v583_v62 }
 0x145   : > { %v575_v63 = vpop.f32.mrf.mxu2 }
 0x146   : > { %v576_v0 = vadd.f32 %v809_v59, %v575_v63 }
 0x148   : > { %v584_v1 = vadd.f32 %v576_v0, %v305_v22 }
 0x14a   : > { %588 = vst [vmem:[%s302_s22 + $0x8] sm:$0xff] %v584_v1 }
 0x14d   : > { %v578_v2 = vpop.f32.mrf.mxu2 }
 0x14e   : > { %v579_v3 = vadd.f32 %v809_v59, %v578_v2 }
 0x150   : > { %v585_v4 = vadd.f32 %v579_v3, %v306_v29 }
 0x152   : > { %589 = vst [vmem:[%s302_s22 + $0x10] sm:$0xff] %v585_v4 }
 0x155   : > { %v580_v5 = vpop.f32.mrf.mxu2 }
 0x156   : > { %v581_v6 = vadd.f32 %v809_v59, %v580_v5 }
 0x158   : > { %v586_v7 = vadd.f32 %v581_v6, %v307_v30 }
 0x15a   : > { %590 = vst [vmem:[%s302_s22 + $0x18] sm:$0xff] %v586_v7 }
 0x15b PF: > { %s17_s24 = sadd.s32 1, %s816_s24  }
 0x15c   : > { %p14_p4 = scmp.ge.s32.totalorder %s17_s24, 4  }
 0x15e   :  { %16 = sbr.rel (!%p14_p4) target bundleno = 1 (0x1), region = 81 }

</bundles_post_ra>
